<compile_context>
chip_gen: v6e
topology: v6e:2x2x1
jax: 0.10.0
libtpu: 0.0.40
codegen_flags: <defaults>
</compile_context>

<pallas_src>
from typing import NamedTuple

import jax
import jax.numpy as jnp
from jax.experimental import pallas as pl
from jax.experimental.pallas import tpu as pltpu


# ---------------------------------------------------------------------------
# PE buffer construction / caching (init-time, mirrors the PyTorch __init__).
# ---------------------------------------------------------------------------
class PEState(NamedTuple):
    pe2d: jnp.ndarray     # (max_len, D), model dtype
    pe_flat: jnp.ndarray  # (1, max_len * D), model dtype (row-major view of pe2d)


def _build_pe(embedding_dim: int, max_len: int = 5000) -> jnp.ndarray:
    """Replicates the PyTorch pe buffer (computed in f32)."""
    if embedding_dim % 2 != 0:
        # The reference PyTorch module raises a shape-mismatch error for odd
        # d_model; surface a clear error instead of silently diverging.
        raise ValueError(f"embedding_dim must be even, got {embedding_dim}")
    position = jnp.arange(0, max_len, dtype=jnp.float32)[:, None]          # (max_len, 1)
    div_term = jnp.exp(
        jnp.arange(0, embedding_dim, 2, dtype=jnp.float32)
        * (-jnp.log(jnp.float32(10000.0)) / embedding_dim)
    )                                                                       # (D/2,)
    pe = jnp.zeros((max_len, embedding_dim), dtype=jnp.float32)
    pe = pe.at[:, 0::2].set(jnp.sin(position * div_term))
    pe = pe.at[:, 1::2].set(jnp.cos(position * div_term))
    return pe


def init_positional_embedding(embedding_dim: int, max_len: int = 5000,
                              dtype=jnp.float32) -> PEState:
    """Build + cast + pre-flatten pe once (hoisted out of the forward pass)."""
    pe = _build_pe(embedding_dim, max_len).astype(dtype)
    return PEState(pe2d=pe, pe_flat=pe.reshape(1, max_len * embedding_dim))


# ---------------------------------------------------------------------------
# Kernels.
# ---------------------------------------------------------------------------
def _add_pe_flat_kernel(x_ref, pe_ref, o_ref):
    # x_ref: (tb, tf), pe_ref: (1, tf) broadcast over rows, o_ref: (tb, tf)
    o_ref[...] = x_ref[...] + pe_ref[...]


def _add_pe_rows_kernel(x_ref, pe_ref, o_ref):
    # x_ref: (g, S, D), pe_ref: (S, D) broadcast over the g batch slabs.
    o_ref[...] = x_ref[...] + pe_ref[...][None]


# ---------------------------------------------------------------------------
# Tiling heuristics.
# ---------------------------------------------------------------------------
_MIN_FLAT_TILE = 2048           # >= 8 KiB per DMA row segment for f32
_MAX_ROW_SLAB_BYTES = 4 << 20   # one (S, D) slab must fit comfortably in VMEM


def _sublane_multiple(itemsize: int) -> int:
    # 8 rows for 4-byte, 16 for 2-byte, 32 for 1-byte dtypes.
    return max(8, 32 // max(1, itemsize))


def _target_block_bytes() -> int:
    """Per-block byte target, generation-aware.

    v5e/v6e: 2 MiB already sits ~90% of the HBM roofline.  v7x streams a
    2 MiB block in well under 1us, so grow to ~5 MiB to keep the fixed
    per-grid-step overhead (~0.35us) below ~15% of each step.
    """
    try:
        kind = jax.devices()[0].device_kind.lower()
    except Exception:  # pragma: no cover - defensive, never fail on probing
        kind = ""
    if "v7" in kind:
        return 5 << 20
    return 2 << 20


def _choose_flat_tiles(batch: int, flat: int, itemsize: int,
                       target_bytes: int) -> tuple[int, int]:
    """(tb, tf) for the flat (B, S*D) layout.

    tf is lane-dense (multiple of 128 or the full axis) and never below
    _MIN_FLAT_TILE; if the full-batch block would exceed the byte target we
    tile the batch axis in sublane-multiple chunks instead of shrinking tf.
    """
    sub = _sublane_multiple(itemsize)
    if flat <= _MIN_FLAT_TILE:
        tf = flat                                   # full axis -> always legal
    else:
        per_row = target_bytes // max(1, batch * itemsize)
        tf = max(_MIN_FLAT_TILE, (per_row // 128) * 128)
        if tf >= flat:
            tf = flat
    if batch > sub and batch * tf * itemsize > target_bytes:
        tb = target_bytes // max(1, tf * itemsize)
        tb = max(sub, (tb // sub) * sub)            # multiple of 8/16/32 rows
        tb = min(batch, tb)
    else:
        tb = batch
    return tb, tf


# ---------------------------------------------------------------------------
# Forward.
# ---------------------------------------------------------------------------
def positional_embedding_forward(x: jnp.ndarray, pe_state: PEState,
                                 *, donate: bool = False) -> jnp.ndarray:
    """x: (B, S, D). Returns x + pe[:S][None] in x.dtype."""
    B, S, D = x.shape
    max_len, pe_dim = pe_state.pe2d.shape
    if D != pe_dim:
        raise ValueError(f"x embedding dim {D} != pe embedding dim {pe_dim}")
    if S > max_len:
        raise ValueError(f"sequence length {S} exceeds pe max_len {max_len}")

    # Prefer initializing the PEState in the model dtype; this cast is a
    # fallback and only fires on a dtype mismatch.
    pe2d = pe_state.pe2d
    pe_flat_full = pe_state.pe_flat
    if pe2d.dtype != x.dtype:
        pe2d = pe2d.astype(x.dtype)
        pe_flat_full = pe_flat_full.astype(x.dtype)

    itemsize = jnp.dtype(x.dtype).itemsize
    target = _target_block_bytes()
    aliases = {0: 0} if donate else {}
    vmem_limit = 32 * 1024 * 1024

    slab_bytes = S * D * itemsize
    if D % 128 == 0 and slab_bytes <= _MAX_ROW_SLAB_BYTES:
        # ---- Row path: contiguous (g, S, D) slabs, pe DMA'd exactly once. ----
        g_desired = max(1, min(B, target // max(1, slab_bytes)))
        # Largest divisor of B not exceeding g_desired -> every block is full.
        g = next(d for d in range(g_desired, 0, -1) if B % d == 0)
        grid = (pl.cdiv(B, g),)
        pe_slice = pe2d[:S]                          # (S, D), slice only
        return pl.pallas_call(
            _add_pe_rows_kernel,
            out_shape=jax.ShapeDtypeStruct((B, S, D), x.dtype),
            grid_spec=pltpu.PrefetchScalarGridSpec(
                num_scalar_prefetch=0,
                grid=grid,
                in_specs=[
                    pl.BlockSpec((g, S, D), lambda b: (b, 0, 0)),
                    pl.BlockSpec((S, D), lambda b: (0, 0)),   # constant block
                ],
                out_specs=pl.BlockSpec((g, S, D), lambda b: (b, 0, 0)),
            ),
            compiler_params=pltpu.CompilerParams(
                dimension_semantics=("parallel",),
                vmem_limit_bytes=vmem_limit,
            ),
            input_output_aliases=aliases,
        )(x, pe_slice)

    # ---- Flat path: lane-dense (B, S*D) layout (any D). ----
    F = S * D
    x_flat = x.reshape(B, F)
    pe_flat = pe_flat_full[:, :F]                    # contiguous prefix slice
    tb, tf = _choose_flat_tiles(B, F, itemsize, target)
    # Flat axis outer, batch axis inner: the pe block index is constant across
    # inner steps, so the pipeline skips re-DMA of pe.
    grid = (pl.cdiv(F, tf), pl.cdiv(B, tb))
    out_flat = pl.pallas_call(
        _add_pe_flat_kernel,
        out_shape=jax.ShapeDtypeStruct((B, F), x.dtype),
        grid_spec=pltpu.PrefetchScalarGridSpec(
            num_scalar_prefetch=0,
            grid=grid,
            in_specs=[
                pl.BlockSpec((tb, tf), lambda t, b: (b, t)),
                pl.BlockSpec((1, tf), lambda t, b: (0, t)),
            ],
            out_specs=pl.BlockSpec((tb, tf), lambda t, b: (b, t)),
        ),
        compiler_params=pltpu.CompilerParams(
            dimension_semantics=("parallel", "parallel"),
            vmem_limit_bytes=vmem_limit,
        ),
        input_output_aliases=aliases,
    )(x_flat, pe_flat)
    return out_flat.reshape(B, S, D)


# ---------------------------------------------------------------------------
# Self-test.
# ---------------------------------------------------------------------------
if __name__ == "__main__":
    MAX_LEN = 64
    key = jax.random.PRNGKey(0)

    # Case 1: small module-consistent shape (D not a multiple of 128 -> flat path).
    B, S, D = 2, 8, 32
    x = jax.random.normal(key, (B, S, D), dtype=jnp.float32)
    state = init_positional_embedding(D, max_len=MAX_LEN, dtype=jnp.float32)
    out = jax.block_until_ready(positional_embedding_forward(x, state))
    ref = x + state.pe2d[:S, :][None, :, :]
    assert out.shape == (B, S, D)
    assert jnp.allclose(out, ref, atol=1e-6, rtol=1e-6), "flat-path mismatch"

    # Case 2: lane-dense embedding (D % 128 == 0 -> contiguous row path).
    D2 = 128
    x2 = jax.random.normal(jax.random.PRNGKey(0), (B, S, D2), dtype=jnp.float32)
    state2 = init_positional_embedding(D2, max_len=MAX_LEN, dtype=jnp.float32)
    out2 = jax.block_until_ready(positional_embedding_forward(x2, state2))
    ref2 = x2 + state2.pe2d[:S, :][None, :, :]
    assert out2.shape == (B, S, D2)
    assert jnp.allclose(out2, ref2, atol=1e-6, rtol=1e-6), "row-path mismatch"

    print("KERNEL_OK")
</pallas_src>

<mosaic_0001>
module attributes {stable_mosaic.version = 11 : i64} {
  func.func @_add_pe_flat_kernel(%arg0: i32, %arg1: i32, %arg2: memref<2x256xf32, #tpu.memory_space<vmem>>, %arg3: memref<1x256xf32, #tpu.memory_space<vmem>>, %arg4: memref<2x256xf32, #tpu.memory_space<vmem>>) attributes {dimension_semantics = [#tpu.dimension_semantics<parallel>, #tpu.dimension_semantics<parallel>], iteration_bounds = array<i64: 1, 1>, scalar_prefetch = 0 : i64, scratch_operands = 0 : i64, tpu.core_type = #tpu.core_type<tc>, window_params = [{transform_indices = @transform_0, window_bounds = array<i64: 2, 256>}, {transform_indices = @transform_1, window_bounds = array<i64: 1, 256>}, {transform_indices = @transform_2, window_bounds = array<i64: 2, 256>}]} {
    %c0 = arith.constant 0 : index
    %c0_0 = arith.constant 0 : index
    %0 = vector.load %arg2[%c0, %c0_0] : memref<2x256xf32, #tpu.memory_space<vmem>>, vector<2x256xf32>
    %c0_1 = arith.constant 0 : index
    %c0_2 = arith.constant 0 : index
    %1 = vector.load %arg3[%c0_1, %c0_2] : memref<1x256xf32, #tpu.memory_space<vmem>>, vector<1x256xf32>
    %2 = vector.broadcast %1 : vector<1x256xf32> to vector<2x256xf32>
    %3 = arith.addf %0, %2 : vector<2x256xf32>
    %c0_3 = arith.constant 0 : index
    %c0_4 = arith.constant 0 : index
    %4 = vector.load %arg4[%c0_3, %c0_4] : memref<2x256xf32, #tpu.memory_space<vmem>>, vector<2x256xf32>
    tpu.vector_store %arg4[%c0_3, %c0_4], %3 {strides = array<i32>} : memref<2x256xf32, #tpu.memory_space<vmem>>, vector<2x256xf32>,
    return
  }
  func.func @transform_0(%arg0: i32, %arg1: i32) -> (i32, i32) {
    %c0_i32 = arith.constant 0 : i32
    return %arg1, %arg0 : i32, i32
  }
  func.func @transform_1(%arg0: i32, %arg1: i32) -> (i32, i32) {
    %c0_i32 = arith.constant 0 : i32
    %c0_i32_0 = arith.constant 0 : i32
    return %c0_i32, %arg0 : i32, i32
  }
  func.func @transform_2(%arg0: i32, %arg1: i32) -> (i32, i32) {
    %c0_i32 = arith.constant 0 : i32
    return %arg1, %arg0 : i32, i32
  }
}

</mosaic_0001>

<bundles_post_ra>
// kernel: tpu_custom_call.1
= control target key start
LH: loop header
LB: loop body
LE: loop exit
PB: predicated region body
PF: predicated region fallthrough
CT: control target
= control target key end

     0   :  { %7 = vsyncpa [#allocation3], 0  ;;  %s172_s0 = inlined_call_operand.hbm [shape: f32[2,256], index: 0, kind: input, shape index: {}]   ;;  %s173_s1 = inlined_call_operand.hbm [shape: f32[1,256], index: 1, kind: input, shape index: {}]   ;;  %s174_s2 = inlined_call_operand.hbm [shape: f32[2,256], index: 2, kind: output, shape index: {}]  }
   0x1   :  { %8 = vsyncpa [#allocation6], 0 }
   0x2   :  { %9 = vsyncpa [#allocation4], 0  ;;  %s144_s9 = smov [#allocation2]   ;;  %s145_s11 = smov [#allocation5]  }
   0x3   :  { %s16_s10 = sshll.u32 %s144_s9, 4  ;;  %s26_s12 = sshll.u32 %s145_s11, 4  ;;  %s17_s10 = int_to_ptr.vmem [resolvable:$true] %s16_s10  ;;  %s27_s12 = int_to_ptr.vmem [resolvable:$true] %s26_s12 }
   0x4   :  { %s86_s13 = scalar_lea.vmem %s17_s10, 64  ;;  %p91_p1 = scmp.lt.s32.totalorder %s17_s10, %s17_s10 }
   0x5   :  { %p87_p0 = scmp.ne.s32.totalorder %s17_s10, %s86_s13  ;;  %p92_p2 = scmp.lt.s32.totalorder %s86_s13, %s86_s13 }
   0x7   :  { %p93_p3 = por %p92_p2, %p91_p1 }
   0x9   :  { %p94_p4 = pnand %p93_p3, %p87_p0 }
   0xb   :  { %97 = shalt.err (!%p94_p4)
}
   0xc   :  { %19 = dma.hbm_to_vmem [thread:$0]  %s172_s0, 64, %s17_s10, [#allocation3]  }
   0xd   :  { %s106_s16 = scalar_lea.vmem %s27_s12, 32  ;;  %p111_p6 = scmp.lt.s32.totalorder %s27_s12, %s27_s12 }
   0xe   :  { %p107_p5 = scmp.ne.s32.totalorder %s27_s12, %s106_s16  ;;  %p112_p7 = scmp.lt.s32.totalorder %s106_s16, %s106_s16 }
  0x10   :  { %p113_p8 = por %p112_p7, %p111_p6 }
  0x12   :  { %p114_p9 = pnand %p113_p8, %p107_p5 }
  0x14   :  { %117 = shalt.err (!%p114_p9)
}
  0x15   :  { %29 = dma.hbm_to_vmem [thread:$0]  %s173_s1, 32, %s27_s12, [#allocation6]  }
  0x16   :  { %138 = dma.done.wait [#allocation3], 64  }
  0x17   :  { %139 = vsyncadd [#allocation3], 4294967232 }
  0x18   :  { %140 = dma.done.wait [#allocation6], 32  }
  0x19   :  { %141 = vsyncadd [#allocation6], 4294967264  ;;  %v39_v0 = vlaneseq  ;;  %v146_v1 = vmov 1983009808   ;;  %v37_v7 = vld [vmem:[#allocation5] sm:$0x3] }
  0x1a   :  { %v49_v2 = vunpack.c.l.s4 %v146_v1  ;;  %v36_v12 = vld [vmem:[#allocation2] sm:$0xf]  ;;  %s147_s0 = smov [#allocation7]  }
  0x1b   :  { %v40_v3 = vshrl.u32 %v39_v0, 7  ;;  %s64_s19 = sshll.u32 %s147_s0, 4  ;;  %s65_s19 = int_to_ptr.vmem [resolvable:$true] %s64_s19 }
  0x1c   :  { %v50_v6 = vunpack.c.0.s8 %v49_v2  ;;  %s118_s1 = scalar_lea.vmem %s65_s19, 64  ;;  %p123_p11 = scmp.lt.s32.totalorder %s65_s19, %s65_s19 }
  0x1d   :  { %v41_v4 = vsub.s32 0, %v40_v3  ;;  %v45_v5 = vsub.s32 1, %v40_v3  ;;  %p119_p10 = scmp.ne.s32.totalorder %s65_s19, %s118_s1  ;;  %p124_p12 = scmp.lt.s32.totalorder %s118_s1, %s118_s1 }
  0x1e   :  { %v53_v10 = vsub.s32 %v50_v6, %v40_v3 }
  0x1f   :  { %v42_v8 = vrot.slane %v37_v7, %v41_v4  ;;  %v46_v9 = vrot.slane %v37_v7, %v45_v5  ;;  %p125_p13 = por %p124_p12, %p123_p11 }
  0x21   :  { %v47_v11 = vcombine.low %v42_v8, %v46_v9  ;;  %p126_p0 = pnand %p125_p13, %p119_p10 }
  0x23   :  { %v54_v13 = vrot.slane %v47_v11, %v53_v10 }
  0x25   :  { %v56_v14 = vadd.f32 %v54_v13, %v36_v12 }
  0x27   :  { %57 = vst [vmem:[#allocation7] sm:$0xf] %v56_v14 }
  0x28   :  { %129 = shalt.err (!%p126_p0)
}
  0x29   :  { %67 = dma.vmem_to_hbm [thread:$0]  %s65_s19, 64, %s174_s2, [#allocation4]  }
  0x2a   :  { %142 = dma.done.wait [#allocation4], 64  }
  0x2b   :  { %143 = vsyncadd [#allocation4], 4294967232 }
  0x2c   :  { %71 = vsyncpa [#allocation3], 1 }
  0x2d   :  { %72 = vsyncpa [#allocation6], 1 }
  0x2e   :  { %73 = vsyncpa [#allocation4], 1 }

</bundles_post_ra>
